<compile_context>
chip_gen: v5e
topology: v5e:2x2
jax: 0.10.0
libtpu: 0.0.40
codegen_flags: <defaults>
</compile_context>

<pallas_src>
import functools

import jax
import jax.numpy as jnp
from jax.experimental import pallas as pl
from jax.experimental.pallas import tpu as pltpu


_LANE = 128          # output-channel axis padded to a multiple of this
_SUBLANE = 8         # contraction-dim padding granularity
_ROWS_TARGET = 1024  # target output rows per pass-1 strip
_TILE_M_TARGET = 2048  # target rows per pass-2 block (lane-dense, unmasked stores)


def _round_up(v, m):
    return (v + m - 1) // m * m


def _vmem_budget_bytes():
    """3/4 of the reported per-core VMEM capacity; conservative fallback (fits v7x)."""
    cap = 64 * 1024 * 1024
    try:
        cap = int(pltpu.get_tpu_info().vmem_capacity_bytes)
    except Exception:
        pass
    return min(int(cap * 3 // 4), 96 * 1024 * 1024)


def _pick_tile_m(m_p, vmem_limit, cout_p, y_item):
    """Largest 128-multiple divisor of m_p within the pass-2 VMEM / target budget."""
    cap_rows = max(_LANE, vmem_limit // (4 * cout_p * (y_item + 4)))
    target = min(_TILE_M_TARGET, cap_rows)
    if m_p <= target:
        return m_p
    d = (target // _LANE) * _LANE
    while d >= _LANE:
        if m_p % d == 0:
            return d
        d -= _LANE
    return m_p  # fallback: single full-M block


def _conv_stats_kernel(x_ref, w_ref, y_ref, sum_ref, sq_ref, acc_ref, *,
                       k, stride, bh, ow):
    """One (image, OH-strip) step: conv as k MXU matmuls (K = k*Cin) + channel stats.

    x_ref  : (1, strip_in, OW, KC_p)  strip incl. its k-1 halo rows, kw folded into C
    w_ref  : (k, KC_p, Cout_p)        kh-major weights, (kw, cin) folded into KC
    y_ref  : (1, bh*OW, Cout_p)       conv rows for this strip (bf16 or f32)
    sum_ref/sq_ref : (1, 8, Cout_p)   per-channel partial sum / sum-of-squares (f32)
    acc_ref: VMEM scratch (bh*OW, Cout_p) f32 accumulator
    """
    kc = x_ref.shape[-1]
    cout_p = w_ref.shape[-1]
    rows = bh * ow
    for kh in range(k):
        if stride == 1:
            tap = x_ref[0, kh:kh + bh]                       # (bh, OW, KC_p)
        else:
            tap = x_ref[0, pl.ds(kh, bh, stride=stride)]     # H-stride only; W-stride pre-folded
        part = jnp.dot(tap.reshape(rows, kc), w_ref[kh],
                       preferred_element_type=jnp.float32)
        if kh == 0:
            acc_ref[...] = part
        else:
            acc_ref[...] += part
    acc = acc_ref[...]
    y_ref[0] = acc.astype(y_ref.dtype)
    sum_ref[0] = jnp.broadcast_to(jnp.sum(acc, axis=0, keepdims=True), (8, cout_p))
    sq_ref[0] = jnp.broadcast_to(jnp.sum(acc * acc, axis=0, keepdims=True), (8, cout_p))


def _bn_apply_nchw_kernel(y_ref, scale_ref, shift_ref, out_ref):
    """Folded BN affine on a (tile_m, Cout_p) block, transposed in-kernel to NCHW layout."""
    y = y_ref[0].astype(jnp.float32)
    out_ref[0] = jnp.transpose(y * scale_ref[...] + shift_ref[...], (1, 0))


def conv_block_forward(x, weight, bias, gamma, beta, *, stride=1, padding=0,
                       eps=1e-5, compute_dtype=jnp.bfloat16, row_block=None):
    """BatchNorm2d(Conv2d(x)) with training-mode batch statistics.

    x:      (N, Cin, H, W)     float32, NCHW
    weight: (Cout, Cin, k, k)  float32
    bias:   (Cout,)            accepted for interface parity; unused (cancels exactly
                               in y - mean under training-mode BatchNorm)
    gamma/beta: (Cout,)        BN affine parameters
    returns (N, Cout, OH, OW)  float32, NCHW
    """
    del bias  # mathematically a no-op under training-mode BatchNorm
    n, cin, h, w = x.shape
    cout, _, k, _ = weight.shape
    oh = (h + 2 * padding - k) // stride + 1
    ow = (w + 2 * padding - k) // stride + 1
    ohow = oh * ow

    cout_p = _round_up(cout, _LANE)
    kc = k * cin
    kc_p = _round_up(kc, _SUBLANE)
    in_item = jnp.dtype(compute_dtype).itemsize
    y_dtype = (jnp.float32 if jnp.dtype(compute_dtype) == jnp.dtype(jnp.float32)
               else jnp.bfloat16)
    y_item = jnp.dtype(y_dtype).itemsize
    vmem_limit = _vmem_budget_bytes()

    # ---- pass-1 row block (bh output rows per strip), auto-shrunk to the VMEM budget
    if row_block is None:
        bh = max(1, min(oh, _ROWS_TARGET // max(ow, 1)))
    else:
        bh = max(1, min(oh, int(row_block)))

    def _pass1_bytes(bh_):
        strip_in_ = (bh_ - 1) * stride + k
        rows_ = bh_ * ow
        return int(1.5 * (2 * strip_in_ * ow * kc_p * in_item    # double-buffered strips
                          + 2 * k * kc_p * cout_p * in_item      # weights (double buffered)
                          + rows_ * cout_p * 4                   # f32 accumulator scratch
                          + 2 * rows_ * cout_p * y_item          # y output block
                          + 4 * 8 * cout_p * 4))                 # stats blocks

    while bh > 1 and _pass1_bytes(bh) > vmem_limit:
        bh = max(1, bh // 2)

    n_strips = -(-oh // bh)
    oh_pad = n_strips * bh
    strip_in = (bh - 1) * stride + k
    g = n * n_strips
    rows = bh * ow
    m_p = oh_pad * ow

    # ---- host-side layout prep (kw + W-stride folded into channels; halo'd strips) --
    hp, wp = h + 2 * padding, w + 2 * padding
    xp = jnp.transpose(x, (0, 2, 3, 1))                                    # NCHW -> NHWC
    xp = jnp.pad(xp, ((0, 0), (padding, padding), (padding, padding), (0, 0)))
    taps = [xp[:, :, kw:kw + (ow - 1) * stride + 1:stride, :] for kw in range(k)]
    xr = jnp.concatenate(taps, axis=-1)                                    # (N, Hp, OW, k*Cin)
    hp_needed = (oh_pad - 1) * stride + k
    xr = jnp.pad(xr, ((0, 0), (0, max(0, hp_needed - hp)), (0, 0), (0, kc_p - kc)))
    xs = jnp.stack([xr[:, s * bh * stride: s * bh * stride + strip_in]
                    for s in range(n_strips)], axis=1)                     # (N,S,strip_in,OW,KC_p)
    xs = xs.reshape(g, strip_in, ow, kc_p).astype(compute_dtype)

    wmat = jnp.transpose(weight, (2, 3, 1, 0)).reshape(k, kc, cout)        # [kh, kw*cin+c, o]
    wmat = jnp.pad(wmat, ((0, 0), (0, kc_p - kc),
                          (0, cout_p - cout))).astype(compute_dtype)       # (k, KC_p, Cout_p)

    # ---- pass 1: conv + per-channel partial statistics (grid over image x OH-strip) --
    kernel1 = functools.partial(_conv_stats_kernel, k=k, stride=stride, bh=bh, ow=ow)
    y, psum, psq = pl.pallas_call(
        kernel1,
        out_shape=(
            jax.ShapeDtypeStruct((g, rows, cout_p), y_dtype),
            jax.ShapeDtypeStruct((g, 8, cout_p), jnp.float32),
            jax.ShapeDtypeStruct((g, 8, cout_p), jnp.float32),
        ),
        grid=(g,),
        in_specs=[
            pl.BlockSpec((1, strip_in, ow, kc_p), lambda i: (i, 0, 0, 0)),
            # Constant-index weights: Pallas skips the re-fetch between steps; they are
            # small here (k*KC_p*Cout_p), so the extra pipeline copy is negligible.
            pl.BlockSpec((k, kc_p, cout_p), lambda i: (0, 0, 0)),
        ],
        out_specs=(
            pl.BlockSpec((1, rows, cout_p), lambda i: (i, 0, 0)),
            pl.BlockSpec((1, 8, cout_p), lambda i: (i, 0, 0)),
            pl.BlockSpec((1, 8, cout_p), lambda i: (i, 0, 0)),
        ),
        scratch_shapes=[pltpu.VMEM((rows, cout_p), jnp.float32)],
        compiler_params=pltpu.CompilerParams(
            dimension_semantics=("parallel",),        # shards strips across TCs
            vmem_limit_bytes=vmem_limit),
        cost_estimate=pl.CostEstimate(
            flops=2 * g * rows * kc_p * k * cout_p,
            transcendentals=0,
            bytes_accessed=int(xs.size) * in_item + int(wmat.size) * in_item
                           + g * rows * cout_p * y_item + 2 * g * 8 * cout_p * 4),
    )(xs, wmat)

    # ---- tiny host reduction: Chan's parallel variance combine + folded affine -----
    last_rows = (oh - (n_strips - 1) * bh) * ow          # real rows in each image's last strip
    counts = jnp.full((n_strips,), bh * ow, jnp.float32).at[-1].set(float(last_rows))
    counts = jnp.tile(counts, (n,)).reshape(g, 1)                          # (G, 1)
    s1 = psum[:, 0, :]                                                     # (G, Cout_p)
    s2 = psq[:, 0, :]
    total_count = jnp.float32(n * ohow)
    mean_s = s1 / counts
    m2_s = s2 - s1 * mean_s                              # per-strip sum of squared deviations
    mean = jnp.sum(s1, axis=0) / total_count                               # (Cout_p,)
    m2 = jnp.sum(m2_s, axis=0) + jnp.sum(counts * (mean_s - mean) ** 2, axis=0)
    var = jnp.maximum(m2 / total_count, 0.0)
    inv = jax.lax.rsqrt(var + eps)
    gamma_p = jnp.pad(gamma.astype(jnp.float32), (0, cout_p - cout))
    beta_p = jnp.pad(beta.astype(jnp.float32), (0, cout_p - cout))
    scale = (gamma_p * inv).reshape(1, cout_p)           # gamma folded into 1/std
    shift = (beta_p - mean * gamma_p * inv).reshape(1, cout_p)

    # ---- pass 2: folded affine on big lane-dense blocks + in-kernel NCHW transpose --
    yv = y.reshape(n, m_p, cout_p)                       # free reshape (contiguous)
    tile_m = _pick_tile_m(m_p, vmem_limit, cout_p, y_item)
    out_p = pl.pallas_call(
        _bn_apply_nchw_kernel,
        out_shape=jax.ShapeDtypeStruct((n, cout_p, m_p), jnp.float32),
        grid=(n, m_p // tile_m),
        in_specs=[
            pl.BlockSpec((1, tile_m, cout_p), lambda i, j: (i, j, 0)),
            pl.BlockSpec((1, cout_p), lambda i, j: (0, 0)),
            pl.BlockSpec((1, cout_p), lambda i, j: (0, 0)),
        ],
        out_specs=pl.BlockSpec((1, cout_p, tile_m), lambda i, j: (i, 0, j)),
        compiler_params=pltpu.CompilerParams(
            dimension_semantics=("parallel", "parallel"),
            vmem_limit_bytes=vmem_limit),
        cost_estimate=pl.CostEstimate(
            flops=2 * n * m_p * cout_p,
            transcendentals=0,
            bytes_accessed=n * m_p * cout_p * (y_item + 4) + 4 * cout_p * 4),
    )(yv, scale, shift)

    # Only the small channel / row un-padding slice remains on the host; the layout is
    # already NCHW, so the final reshape is free.
    return out_p[:, :cout, :ohow].reshape(n, cout, oh, ow)


def _reference(x, weight, bias, gamma, beta, *, stride, padding, eps):
    """Plain-JAX reference (conv bias included, to show it cancels under training-mode BN)."""
    y = jax.lax.conv_general_dilated(
        x.astype(jnp.float32), weight.astype(jnp.float32),
        window_strides=(stride, stride),
        padding=[(padding, padding), (padding, padding)],
        dimension_numbers=("NCHW", "OIHW", "NCHW"))
    y = y + bias.reshape(1, -1, 1, 1)
    mean = jnp.mean(y, axis=(0, 2, 3), keepdims=True)
    var = jnp.mean((y - mean) ** 2, axis=(0, 2, 3), keepdims=True)
    yhat = (y - mean) * jax.lax.rsqrt(var + eps)
    return yhat * gamma.reshape(1, -1, 1, 1) + beta.reshape(1, -1, 1, 1)


if __name__ == "__main__":
    # ConvBlock(in_c=4, out_c=8, k=3, s=1, p=1) on a (2, 4, 16, 16) input.
    N, IN_C, H, W = 2, 4, 16, 16
    OUT_C, K, S, P = 8, 3, 1, 1
    EPS = 1e-5

    key = jax.random.PRNGKey(0)
    kx, kw_, kb = jax.random.split(key, 3)
    x = jax.random.normal(kx, (N, IN_C, H, W), dtype=jnp.float32)

    fan_in = IN_C * K * K
    bound = 1.0 / (fan_in ** 0.5)
    weight = jax.random.uniform(kw_, (OUT_C, IN_C, K, K), jnp.float32, -bound, bound)
    bias = jax.random.uniform(kb, (OUT_C,), jnp.float32, -bound, bound)
    gamma = jnp.ones((OUT_C,), jnp.float32)   # BN weight init
    beta = jnp.zeros((OUT_C,), jnp.float32)   # BN bias init

    ref = _reference(x, weight, bias, gamma, beta, stride=S, padding=P, eps=EPS)

    # f32 compute path: tight validation of conv / statistics / affine / NCHW writeback.
    out_f32 = jax.block_until_ready(conv_block_forward(
        x, weight, bias, gamma, beta, stride=S, padding=P, eps=EPS,
        compute_dtype=jnp.float32))
    assert out_f32.shape == (N, OUT_C, H, W)
    assert jnp.allclose(out_f32, ref, atol=1e-4, rtol=1e-4), "f32 path mismatch"

    # f32 path with a forced small row block: exercises multi-strip row blocking,
    # the halo duplication, and the Chan variance combine.
    out_rb = jax.block_until_ready(conv_block_forward(
        x, weight, bias, gamma, beta, stride=S, padding=P, eps=EPS,
        compute_dtype=jnp.float32, row_block=4))
    assert jnp.allclose(out_rb, ref, atol=1e-4, rtol=1e-4), "row-blocked path mismatch"

    # Default path: bf16 MXU inputs/weights, f32 accumulation, bf16 intermediate y.
    out_bf16 = jax.block_until_ready(conv_block_forward(
        x, weight, bias, gamma, beta, stride=S, padding=P, eps=EPS))
    assert out_bf16.shape == (N, OUT_C, H, W)
    assert jnp.allclose(out_bf16, ref, atol=5e-2, rtol=5e-2), "bf16 path mismatch"

    print("KERNEL_OK")
</pallas_src>

<mosaic_0001>
module attributes {stable_mosaic.version = 11 : i64} {
  func.func @_conv_stats_kernel(%arg0: i32, %arg1: memref<1x18x16x16xf32, #tpu.memory_space<vmem>>, %arg2: memref<3x16x128xf32, #tpu.memory_space<vmem>>, %arg3: memref<1x256x128xf32, #tpu.memory_space<vmem>>, %arg4: memref<1x8x128xf32, #tpu.memory_space<vmem>>, %arg5: memref<1x8x128xf32, #tpu.memory_space<vmem>>, %arg6: memref<256x128xf32, #tpu.memory_space<vmem>>) attributes {dimension_semantics = [#tpu.dimension_semantics<parallel>], iteration_bounds = array<i64: 2>, scalar_prefetch = 0 : i64, scratch_operands = 1 : i64, tpu.core_type = #tpu.core_type<tc>, window_params = [{transform_indices = @transform_0, window_bounds = array<i64: 1, 18, 16, 16>}, {pipeline_mode = #tpu.pipeline_mode<synchronous>, transform_indices = @transform_1, window_bounds = array<i64: 3, 16, 128>}, {transform_indices = @transform_2, window_bounds = array<i64: 1, 256, 128>}, {transform_indices = @transform_3, window_bounds = array<i64: 1, 8, 128>}, {transform_indices = @transform_4, window_bounds = array<i64: 1, 8, 128>}]} {
    %c0 = arith.constant 0 : index
    %c0_0 = arith.constant 0 : index
    %c0_1 = arith.constant 0 : index
    %c0_2 = arith.constant 0 : index
    %0 = vector.load %arg1[%c0, %c0_0, %c0_1, %c0_2] : memref<1x18x16x16xf32, #tpu.memory_space<vmem>>, vector<1x16x16x16xf32>
    %1 = vector.shape_cast %0 : vector<1x16x16x16xf32> to vector<16x16x16xf32>
    %2 = vector.shape_cast %1 : vector<16x16x16xf32> to vector<256x16xf32>
    %c0_3 = arith.constant 0 : index
    %c0_4 = arith.constant 0 : index
    %c0_5 = arith.constant 0 : index
    %3 = vector.load %arg2[%c0_3, %c0_4, %c0_5] : memref<3x16x128xf32, #tpu.memory_space<vmem>>, vector<1x16x128xf32>
    %4 = vector.shape_cast %3 : vector<1x16x128xf32> to vector<16x128xf32>
    %cst = arith.constant dense<0.000000e+00> : vector<256x128xf32>
    %5 = tpu.matmul %2, %4, %cst {dimension_numbers = #tpu.dot_dimension_numbers<[1], [0], [0], [1], [0, 0, 1, 1], [], []>} : vector<256x16xf32>, vector<16x128xf32>, vector<256x128xf32> -> vector<256x128xf32>
    %c0_6 = arith.constant 0 : index
    %c0_7 = arith.constant 0 : index
    %6 = vector.load %arg6[%c0_6, %c0_7] : memref<256x128xf32, #tpu.memory_space<vmem>>, vector<256x128xf32>
    tpu.vector_store %arg6[%c0_6, %c0_7], %5 {strides = array<i32>} : memref<256x128xf32, #tpu.memory_space<vmem>>, vector<256x128xf32>,
    %c0_8 = arith.constant 0 : index
    %c1 = arith.constant 1 : index
    %c0_9 = arith.constant 0 : index
    %c0_10 = arith.constant 0 : index
    %7 = vector.load %arg1[%c0_8, %c1, %c0_9, %c0_10] : memref<1x18x16x16xf32, #tpu.memory_space<vmem>>, vector<1x16x16x16xf32>
    %8 = vector.shape_cast %7 : vector<1x16x16x16xf32> to vector<16x16x16xf32>
    %9 = vector.shape_cast %8 : vector<16x16x16xf32> to vector<256x16xf32>
    %c1_11 = arith.constant 1 : index
    %c0_12 = arith.constant 0 : index
    %c0_13 = arith.constant 0 : index
    %10 = vector.load %arg2[%c1_11, %c0_12, %c0_13] : memref<3x16x128xf32, #tpu.memory_space<vmem>>, vector<1x16x128xf32>
    %11 = vector.shape_cast %10 : vector<1x16x128xf32> to vector<16x128xf32>
    %cst_14 = arith.constant dense<0.000000e+00> : vector<256x128xf32>
    %12 = tpu.matmul %9, %11, %cst_14 {dimension_numbers = #tpu.dot_dimension_numbers<[1], [0], [0], [1], [0, 0, 1, 1], [], []>} : vector<256x16xf32>, vector<16x128xf32>, vector<256x128xf32> -> vector<256x128xf32>
    %c0_15 = arith.constant 0 : index
    %c0_16 = arith.constant 0 : index
    %13 = vector.load %arg6[%c0_15, %c0_16] : memref<256x128xf32, #tpu.memory_space<vmem>>, vector<256x128xf32>
    %14 = arith.addf %13, %12 : vector<256x128xf32>
    %c0_17 = arith.constant 0 : index
    %c0_18 = arith.constant 0 : index
    %15 = vector.load %arg6[%c0_17, %c0_18] : memref<256x128xf32, #tpu.memory_space<vmem>>, vector<256x128xf32>
    tpu.vector_store %arg6[%c0_17, %c0_18], %14 {strides = array<i32>} : memref<256x128xf32, #tpu.memory_space<vmem>>, vector<256x128xf32>,
    %c0_19 = arith.constant 0 : index
    %c2 = arith.constant 2 : index
    %c0_20 = arith.constant 0 : index
    %c0_21 = arith.constant 0 : index
    %16 = vector.load %arg1[%c0_19, %c2, %c0_20, %c0_21] : memref<1x18x16x16xf32, #tpu.memory_space<vmem>>, vector<1x16x16x16xf32>
    %17 = vector.shape_cast %16 : vector<1x16x16x16xf32> to vector<16x16x16xf32>
    %18 = vector.shape_cast %17 : vector<16x16x16xf32> to vector<256x16xf32>
    %c2_22 = arith.constant 2 : index
    %c0_23 = arith.constant 0 : index
    %c0_24 = arith.constant 0 : index
    %19 = vector.load %arg2[%c2_22, %c0_23, %c0_24] : memref<3x16x128xf32, #tpu.memory_space<vmem>>, vector<1x16x128xf32>
    %20 = vector.shape_cast %19 : vector<1x16x128xf32> to vector<16x128xf32>
    %cst_25 = arith.constant dense<0.000000e+00> : vector<256x128xf32>
    %21 = tpu.matmul %18, %20, %cst_25 {dimension_numbers = #tpu.dot_dimension_numbers<[1], [0], [0], [1], [0, 0, 1, 1], [], []>} : vector<256x16xf32>, vector<16x128xf32>, vector<256x128xf32> -> vector<256x128xf32>
    %c0_26 = arith.constant 0 : index
    %c0_27 = arith.constant 0 : index
    %22 = vector.load %arg6[%c0_26, %c0_27] : memref<256x128xf32, #tpu.memory_space<vmem>>, vector<256x128xf32>
    %23 = arith.addf %22, %21 : vector<256x128xf32>
    %c0_28 = arith.constant 0 : index
    %c0_29 = arith.constant 0 : index
    %24 = vector.load %arg6[%c0_28, %c0_29] : memref<256x128xf32, #tpu.memory_space<vmem>>, vector<256x128xf32>
    tpu.vector_store %arg6[%c0_28, %c0_29], %23 {strides = array<i32>} : memref<256x128xf32, #tpu.memory_space<vmem>>, vector<256x128xf32>,
    %c0_30 = arith.constant 0 : index
    %c0_31 = arith.constant 0 : index
    %25 = vector.load %arg6[%c0_30, %c0_31] : memref<256x128xf32, #tpu.memory_space<vmem>>, vector<256x128xf32>
    %c0_32 = arith.constant 0 : index
    %c0_33 = arith.constant 0 : index
    %c0_34 = arith.constant 0 : index
    %26 = vector.load %arg3[%c0_32, %c0_33, %c0_34] : memref<1x256x128xf32, #tpu.memory_space<vmem>>, vector<1x256x128xf32>
    %27 = vector.shape_cast %26 : vector<1x256x128xf32> to vector<256x128xf32>
    %28 = vector.shape_cast %25 : vector<256x128xf32> to vector<1x256x128xf32>
    tpu.vector_store %arg3[%c0_32, %c0_33, %c0_34], %28 {strides = array<i32>} : memref<1x256x128xf32, #tpu.memory_space<vmem>>, vector<1x256x128xf32>,
    %cst_35 = arith.constant dense<0.000000e+00> : vector<128xf32>
    %29 = vector.multi_reduction <add>, %25, %cst_35 [0] : vector<256x128xf32> to vector<128xf32>
    %30 = vector.shape_cast %29 : vector<128xf32> to vector<1x128xf32>
    %31 = vector.shape_cast %30 : vector<1x128xf32> to vector<1x128xf32>
    %32 = vector.broadcast %31 : vector<1x128xf32> to vector<8x128xf32>
    %c0_36 = arith.constant 0 : index
    %c0_37 = arith.constant 0 : index
    %c0_38 = arith.constant 0 : index
    %33 = vector.load %arg4[%c0_36, %c0_37, %c0_38] : memref<1x8x128xf32, #tpu.memory_space<vmem>>, vector<1x8x128xf32>
    %34 = vector.shape_cast %33 : vector<1x8x128xf32> to vector<8x128xf32>
    %35 = vector.shape_cast %32 : vector<8x128xf32> to vector<1x8x128xf32>
    tpu.vector_store %arg4[%c0_36, %c0_37, %c0_38], %35 {strides = array<i32>} : memref<1x8x128xf32, #tpu.memory_space<vmem>>, vector<1x8x128xf32>,
    %36 = arith.mulf %25, %25 : vector<256x128xf32>
    %cst_39 = arith.constant dense<0.000000e+00> : vector<128xf32>
    %37 = vector.multi_reduction <add>, %36, %cst_39 [0] : vector<256x128xf32> to vector<128xf32>
    %38 = vector.shape_cast %37 : vector<128xf32> to vector<1x128xf32>
    %39 = vector.shape_cast %38 : vector<1x128xf32> to vector<1x128xf32>
    %40 = vector.broadcast %39 : vector<1x128xf32> to vector<8x128xf32>
    %c0_40 = arith.constant 0 : index
    %c0_41 = arith.constant 0 : index
    %c0_42 = arith.constant 0 : index
    %41 = vector.load %arg5[%c0_40, %c0_41, %c0_42] : memref<1x8x128xf32, #tpu.memory_space<vmem>>, vector<1x8x128xf32>
    %42 = vector.shape_cast %41 : vector<1x8x128xf32> to vector<8x128xf32>
    %43 = vector.shape_cast %40 : vector<8x128xf32> to vector<1x8x128xf32>
    tpu.vector_store %arg5[%c0_40, %c0_41, %c0_42], %43 {strides = array<i32>} : memref<1x8x128xf32, #tpu.memory_space<vmem>>, vector<1x8x128xf32>,
    return
  }
  func.func @transform_0(%arg0: i32) -> (i32, i32, i32, i32) {
    %c0_i32 = arith.constant 0 : i32
    %c0_i32_0 = arith.constant 0 : i32
    %c0_i32_1 = arith.constant 0 : i32
    %c0_i32_2 = arith.constant 0 : i32
    return %arg0, %c0_i32, %c0_i32_0, %c0_i32_1 : i32, i32, i32, i32
  }
  func.func @transform_1(%arg0: i32) -> (i32, i32, i32) {
    %c0_i32 = arith.constant 0 : i32
    %c0_i32_0 = arith.constant 0 : i32
    %c0_i32_1 = arith.constant 0 : i32
    %c0_i32_2 = arith.constant 0 : i32
    return %c0_i32, %c0_i32_0, %c0_i32_1 : i32, i32, i32
  }
  func.func @transform_2(%arg0: i32) -> (i32, i32, i32) {
    %c0_i32 = arith.constant 0 : i32
    %c0_i32_0 = arith.constant 0 : i32
    %c0_i32_1 = arith.constant 0 : i32
    return %arg0, %c0_i32, %c0_i32_0 : i32, i32, i32
  }
  func.func @transform_3(%arg0: i32) -> (i32, i32, i32) {
    %c0_i32 = arith.constant 0 : i32
    %c0_i32_0 = arith.constant 0 : i32
    %c0_i32_1 = arith.constant 0 : i32
    return %arg0, %c0_i32, %c0_i32_0 : i32, i32, i32
  }
  func.func @transform_4(%arg0: i32) -> (i32, i32, i32) {
    %c0_i32 = arith.constant 0 : i32
    %c0_i32_0 = arith.constant 0 : i32
    %c0_i32_1 = arith.constant 0 : i32
    return %arg0, %c0_i32, %c0_i32_0 : i32, i32, i32
  }
}

</mosaic_0001>

<bundles_post_ra>
// kernel: tpu_custom_call.1
= control target key start
LH: loop header
LB: loop body
LE: loop exit
PB: predicated region body
PF: predicated region fallthrough
CT: control target
= control target key end

     0   :  { %10 = vsyncpa [#allocation4], 0  ;;  %s2421_s0 = inlined_call_operand.vmem [shape: f32[2,18,16,16], index: 0, kind: input, shape index: {}]   ;;  %s2422_s1 = inlined_call_operand.vmem [shape: f32[3,16,128], index: 1, kind: input, shape index: {}]   ;;  %s2423_s2 = inlined_call_operand.hbm [shape: f32[2,256,128], index: 2, kind: output, shape index: {0}]   ;;  %s2424_s3 = inlined_call_operand.hbm [shape: f32[2,8,128], index: 3, kind: output, shape index: {1}]   ;;  %s2425_s4 = inlined_call_operand.hbm [shape: f32[2,8,128], index: 4, kind: output, shape index: {2}]  }
   0x1   :  { %12 = vsyncpa [#allocation4 + $0x1], 0 }
   0x2   :  { %13 = vsyncpa [#allocation6], 0 }
   0x3   :  { %15 = vsyncpa [#allocation6 + $0x1], 0  ;;  %s1914_s15 = smov 0   ;;  %s1916_s16 = smov 0  }
   0x4   :  { %s1918_s17 = smov 0   ;;  %s1920_s18 = smov 0  }
   0x5 LB: > { %s1935_s19 = sadd.s32 4294967295, %s1885_s18   ;;  %s1523_s20 = sadd.s32 4294967294, %s1885_s18   ;;  %s1885_s18 = sphi %s1920_s18, %s2431_s18   ;;  %s1881_s17 = sphi %s1918_s17, %s2430_s17   ;;  %s1877_s16 = sphi %s1916_s16, %s2429_s16   ;;  %s1873_s15 = sphi %s1914_s15, %s2428_s15  }
   0x6   : > { %s1939_s21 = sadd.s32 1, %s1885_s18   ;;  %s75_s22 = sadd.s32 1, %s1881_s17 }
   0x7   : > { %s72_s23 = ssub.s32 %s1885_s18, %s1939_s21  ;;  %p85_p0 = scmp.ne.s32.totalorder %s1881_s17, %s1877_s16 }
   0x8   : > { %p73_p1 = scmp.eq.s32.totalorder %s72_s23, 0  ;;  %p86_p2 = scmp.eq.s32.totalorder %s1935_s19, 1 }
   0x9   : > { %p91_p3 = scmp.ne.s32.totalorder %s1877_s16, %s1873_s15  ;;  %p92_p4 = scmp.eq.s32.totalorder %s1523_s20, 1 }
   0xa   : > { %s1952_s24 = scalar_select %p73_p1, %s1881_s17, %s75_s22  }
   0xb   : > { %p1954_p5 = por %p86_p2, %p85_p0  ;;  %p1958_p6 = por %p92_p4, %p91_p3 }
   0xc   : > { %p1526_p7 = scmp.ge.s32.totalorder %s1885_s18, 1  ;;  %p173_p8 = scmp.lt.s32.totalorder %s1885_s18, 3 }
   0xe   : > { %p174_p9 = pnand %p1526_p7, %p173_p8 }
   0xf   : > { %p209_p10 = scmp.lt.s32.totalorder (!%p174_p9), %s1935_s19, 1  ;;  %s2123_s28 = sand.u32 (!%p174_p9), 1, %s1877_s16  }
  0x10   : > { %177 = sbr.rel (%p174_p9) target bundleno = 391 (0x187), region = 28  ;;  %s1527_s29 = sshll.u32 (!%p174_p9), %s2123_s28, 8 }
  0x11   : > { %s2137_s30 = scalar_lea.vmem (!%p174_p9), [#allocation3], %s1527_s29  ;;  %s1704_s5 = sshll.u32 (!%p174_p9), %s1935_s19, 8 }
  0x12   : > { %s1366_s8 = scalar_lea.hbm (!%p174_p9), %s2423_s2, %s1704_s5  ;;  %s1367_s9 = sshll.u32 (!%p174_p9), %s2137_s30, 4  ;;  %s2329_s9 = int_to_ptr.vmem [resolvable:$true] %s1367_s9 }
  0x13   : > { %s1369_s10 = sshll.u32 (!%p174_p9), %s1366_s8, 4  ;;  %s1345_s11 = scalar_lea.sflag (!%p174_p9), [#allocation4], %s2123_s28  ;;  %s1370_s10 = int_to_ptr.hbm [resolvable:$true] %s1369_s10 }
  0x14   : > { %s1777_s12 = sshra.s32 (!%p174_p9), %s1370_s10, 4  ;;  %s1783_s23 = scalar_lea.hbm (!%p174_p9), %s2423_s2, 512  ;;  %s1778_s12 = int_to_ptr.hbm [resolvable:$true] %s1777_s12 }
  0x15   : > { %v247_v0 = vld [vmem:[%s2422_s1 + $0x8] sm:$0xff]  ;;  %v246_v2 = vld [vmem:[%s2422_s1] sm:$0xff]  ;;  %v1596_v4 = vld [vmem:[%s2422_s1 + $0x18] sm:$0xff]  ;;  %s210_s13 = scalar_select %p209_p10, %s1935_s19, 1  ;;  %vm248_vm0 = vcmask 130048  }
  0x16   : > { %v1662_v1 = vld [vmem:[%s2422_s1 + $0x28] sm:$0xff]  ;;  %1705 = vmatpush.msra.mxu3 %v247_v0  ;;  %v1661_v3 = vld [vmem:[%s2422_s1 + $0x20] sm:$0xff]  ;;  %v1595_v5 = vld [vmem:[%s2422_s1 + $0x10] sm:$0xff]  ;;  %359 = vmatpush.msra.mxu0 %v247_v0  ;;  %p1784_p0 = scmp.lt.s32.totalorder %s1778_s12, %s2423_s2 }
  0x17   : > { %977 = vmatpush.msra.mxu2 %v1662_v1  ;;  %636 = vmatpush.msra.mxu1 %v1596_v4  ;;  %s1711_s14 = smul.u32 288, %s210_s13  ;;  %s1779_s13 = scalar_lea.hbm %s1778_s12, 256 }
  0x18   : > { %1706 = vmatpush.msra.mxu3 %v246_v2  ;;  %360 = vmatpush.msra.mxu0 %v246_v2  ;;  %p1780_p11 = scmp.ne.s32.totalorder %s1778_s12, %s1779_s13  ;;  %p1785_p1 = scmp.lt.s32.totalorder %s1783_s23, %s1779_s13 }
  0x19   : > { %978 = vmatpush.msra.mxu2 %v1661_v3  ;;  %637 = vmatpush.msra.mxu1 %v1595_v5  ;;  %s1987_s27 = scalar_lea.vmem %s2421_s0, %s1711_s14 }
  0x1a   : > { %1707 = vmatpush.msrb.mxu3 %v1596_v4  ;;  %v1990_v6 = vld [vmem:[%s1987_s27 + $0xc0] sm:$0xff]  ;;  %v1563_v9 = vld [vmem:[%s1987_s27 + $0x10] sm:$0xff]  ;;  %v2001_v10 = vld [vmem:[%s1987_s27 + $0xc8] sm:$0xff]  ;;  %p1781_p12 = pnand %p1780_p11, %p1954_p5  ;;  %p1786_p2 = por %p1785_p1, %p1784_p0 }
  0x1b   : > { %v1629_v7 = vld [vmem:[%s1987_s27 + $0x20] sm:$0xff]  ;;  %1555 = vmatmul.msk.f32.vlgmr.msra.gmra.mxu3 %vm248_vm0, %v1990_v6  ;;  %1597 = vmatmul.msk.f32.vlgmr.msra.gmra.mxu1 %vm248_vm0, %v1563_v9  ;;  %v1630_v11 = vld [vmem:[%s1987_s27 + $0x28] sm:$0xff]  ;;  %v1564_v13 = vld [vmem:[%s1987_s27 + $0x18] sm:$0xff] }
  0x1c   : > { %v214_v8 = vld [vmem:[%s1987_s27] sm:$0xff]  ;;  %1708 = vmatpush.msrb.mxu3 %v1595_v5  ;;  %1663 = vmatmul.msk.f32.vlgmr.msra.gmra.mxu2 %vm248_vm0, %v1629_v7  ;;  %v215_v12 = vld [vmem:[%s1987_s27 + $0x8] sm:$0xff]  ;;  %v2012_v14 = vld [vmem:[%s1987_s27 + $0xd0] sm:$0xff]  ;;  %p1782_p13 = pneg %p1781_p12 }
  0x1d   : > { %1531 = vmatmul.msk.f32.vlgmr.msra.gmra.mxu0 %vm248_vm0, %v214_v8  ;;  %v1631_v15 = vld [vmem:[%s1987_s27 + $0x30] sm:$0xff]  ;;  %v2021_v16 = vld [vmem:[%s1987_s27 + $0xd8] sm:$0xff]  ;;  %v2030_v18 = vld [vmem:[%s1987_s27 + $0xe0] sm:$0xff] }
  0x1e   : > { %1709 = vmatpush.msra.mxu3 %v1662_v1  ;;  %v1632_v17 = vld [vmem:[%s1987_s27 + $0x38] sm:$0xff]  ;;  %v1633_v19 = vld [vmem:[%s1987_s27 + $0x40] sm:$0xff]  ;;  %v2039_v20 = vld [vmem:[%s1987_s27 + $0xe8] sm:$0xff]  ;;  %p1787_p3 = pnand %p1786_p2, %p1782_p13 }
  0x1f   : > { %v1634_v21 = vld [vmem:[%s1987_s27 + $0x48] sm:$0xff]  ;;  %v2048_v22 = vld [vmem:[%s1987_s27 + $0xf0] sm:$0xff]  ;;  %v2057_v24 = vld [vmem:[%s1987_s27 + $0xf8] sm:$0xff] }
  0x20   : > { %1710 = vmatpush.msra.mxu3 %v1661_v3  ;;  %v1635_v23 = vld [vmem:[%s1987_s27 + $0x50] sm:$0xff]  ;;  %v1636_v25 = vld [vmem:[%s1987_s27 + $0x58] sm:$0xff]  ;;  %v1637_v26 = vld [vmem:[%s1987_s27 + $0x60] sm:$0xff] }
  0x21   : > { %v1638_v27 = vld [vmem:[%s1987_s27 + $0x68] sm:$0xff]  ;;  %v1639_v28 = vld [vmem:[%s1987_s27 + $0x70] sm:$0xff]  ;;  %v1640_v29 = vld [vmem:[%s1987_s27 + $0x78] sm:$0xff] }
  0x22   : > { %v1641_v30 = vld [vmem:[%s1987_s27 + $0x80] sm:$0xff]  ;;  %v1642_v31 = vld [vmem:[%s1987_s27 + $0x88] sm:$0xff]  ;;  %v1643_v33 = vld [vmem:[%s1987_s27 + $0x90] sm:$0xff] }
  0x23   : > { %1556 = vmatmul.msk.f32.gmra.mxu3 %vm248_vm0, %v2001_v10  ;;  %1598 = vmatmul.msk.f32.gmra.mxu1 %vm248_vm0, %v1564_v13  ;;  %v2102_v32 = vld [vmem:[%s1987_s27 + $0x100] sm:$0xff]  ;;  %v2111_v34 = vld [vmem:[%s1987_s27 + $0x108] sm:$0xff]  ;;  %v1644_v35 = vld [vmem:[%s1987_s27 + $0x98] sm:$0xff] }
  0x24   : > { %1664 = vmatmul.msk.f32.gmra.mxu2 %vm248_vm0, %v1630_v11  ;;  %v2120_v36 = vld [vmem:[%s1987_s27 + $0xa0] sm:$0xff]  ;;  %v2135_v43 = vld [vmem:[%s1987_s27 + $0xa8] sm:$0xff]  ;;  %v2149_v50 = vld [vmem:[%s1987_s27 + $0xb0] sm:$0xff] }
  0x25   : > { %1532 = vmatmul.msk.f32.gmra.mxu0 %vm248_vm0, %v215_v12  ;;  %v2162_v61 = vld [vmem:[%s1987_s27 + $0xb8] sm:$0xff] }
  0x2b   : > { %1557 = vmatmul.msk.f32.gmra.mxu3 %vm248_vm0, %v2012_v14  ;;  %1599 = vmatmul.msk.f32.gmra.mxu1 %vm248_vm0, %v1629_v7 }
  0x2c   : > { %1665 = vmatmul.msk.f32.gmra.mxu2 %vm248_vm0, %v1631_v15 }
  0x2d   : > { %1533 = vmatmul.msk.f32.gmra.mxu0 %vm248_vm0, %v1563_v9 }
  0x33   : > { %1558 = vmatmul.msk.f32.gmra.mxu3 %vm248_vm0, %v2021_v16  ;;  %1600 = vmatmul.msk.f32.gmra.mxu1 %vm248_vm0, %v1630_v11 }
  0x34   : > { %1666 = vmatmul.msk.f32.gmra.mxu2 %vm248_vm0, %v1632_v17 }
  0x35   : > { %1534 = vmatmul.msk.f32.gmra.mxu0 %vm248_vm0, %v1564_v13 }
  0x3b   : > { %1559 = vmatmul.msk.f32.gmra.mxu3 %vm248_vm0, %v2030_v18  ;;  %1601 = vmatmul.msk.f32.gmra.mxu1 %vm248_vm0, %v1631_v15 }
  0x3c   : > { %1667 = vmatmul.msk.f32.gmra.mxu2 %vm248_vm0, %v1633_v19 }
  0x3d   : > { %1535 = vmatmul.msk.f32.gmra.mxu0 %vm248_vm0, %v1629_v7 }
  0x43   : > { %1560 = vmatmul.msk.f32.gmra.mxu3 %vm248_vm0, %v2039_v20  ;;  %1602 = vmatmul.msk.f32.gmra.mxu1 %vm248_vm0, %v1632_v17 }
  0x44   : > { %1668 = vmatmul.msk.f32.gmra.mxu2 %vm248_vm0, %v1634_v21 }
  0x45   : > { %1536 = vmatmul.msk.f32.gmra.mxu0 %vm248_vm0, %v1630_v11 }
  0x4b   : > { %1561 = vmatmul.msk.f32.gmra.mxu3 %vm248_vm0, %v2048_v22  ;;  %1603 = vmatmul.msk.f32.gmra.mxu1 %vm248_vm0, %v1633_v19 }
  0x4c   : > { %1669 = vmatmul.msk.f32.gmra.mxu2 %vm248_vm0, %v1635_v23 }
  0x4d   : > { %1537 = vmatmul.msk.f32.gmra.mxu0 %vm248_vm0, %v1631_v15 }
  0x53   : > { %1562 = vmatmul.msk.f32.gmra.mxu3 %vm248_vm0, %v2057_v24  ;;  %1604 = vmatmul.msk.f32.gmra.mxu1 %vm248_vm0, %v1634_v21 }
  0x54   : > { %1670 = vmatmul.msk.f32.gmra.mxu2 %vm248_vm0, %v1636_v25 }
  0x55   : > { %1538 = vmatmul.msk.f32.gmra.mxu0 %vm248_vm0, %v1632_v17 }
  0x5b   : > { %1621 = vmatmul.msk.f32.vlgmr.msrb.gmra.mxu3 %vm248_vm0, %v2012_v14  ;;  %1605 = vmatmul.msk.f32.gmra.mxu1 %vm248_vm0, %v1635_v23 }
  0x5c   : > { %1671 = vmatmul.msk.f32.gmra.mxu2 %vm248_vm0, %v1637_v26 }
  0x5d   : > { %1539 = vmatmul.msk.f32.gmra.mxu0 %vm248_vm0, %v1633_v19 }
  0x63   : > { %1622 = vmatmul.msk.f32.gmra.mxu3 %vm248_vm0, %v2021_v16  ;;  %1606 = vmatmul.msk.f32.gmra.mxu1 %vm248_vm0, %v1636_v25 }
  0x64   : > { %1672 = vmatmul.msk.f32.gmra.mxu2 %vm248_vm0, %v1638_v27 }
  0x65   : > { %1540 = vmatmul.msk.f32.gmra.mxu0 %vm248_vm0, %v1634_v21 }
  0x6b   : > { %1623 = vmatmul.msk.f32.gmra.mxu3 %vm248_vm0, %v2030_v18  ;;  %1607 = vmatmul.msk.f32.gmra.mxu1 %vm248_vm0, %v1637_v26 }
  0x6c   : > { %1673 = vmatmul.msk.f32.gmra.mxu2 %vm248_vm0, %v1639_v28 }
  0x6d   : > { %1541 = vmatmul.msk.f32.gmra.mxu0 %vm248_vm0, %v1635_v23 }
  0x73   : > { %1624 = vmatmul.msk.f32.gmra.mxu3 %vm248_vm0, %v2039_v20  ;;  %1608 = vmatmul.msk.f32.gmra.mxu1 %vm248_vm0, %v1638_v27 }
  0x74   : > { %1674 = vmatmul.msk.f32.gmra.mxu2 %vm248_vm0, %v1640_v29 }
  0x75   : > { %1542 = vmatmul.msk.f32.gmra.mxu0 %vm248_vm0, %v1636_v25 }
  0x7b   : > { %1625 = vmatmul.msk.f32.gmra.mxu3 %vm248_vm0, %v2048_v22  ;;  %1609 = vmatmul.msk.f32.gmra.mxu1 %vm248_vm0, %v1639_v28 }
  0x7c   : > { %1675 = vmatmul.msk.f32.gmra.mxu2 %vm248_vm0, %v1641_v30 }
  0x7d   : > { %1543 = vmatmul.msk.f32.gmra.mxu0 %vm248_vm0, %v1637_v26 }
  0x83   : > { %1626 = vmatmul.msk.f32.gmra.mxu3 %vm248_vm0, %v2057_v24  ;;  %1610 = vmatmul.msk.f32.gmra.mxu1 %vm248_vm0, %v1640_v29 }
  0x84   : > { %1676 = vmatmul.msk.f32.gmra.mxu2 %vm248_vm0, %v1642_v31 }
  0x85   : > { %1544 = vmatmul.msk.f32.gmra.mxu0 %vm248_vm0, %v1638_v27 }
  0x8b   : > { %1627 = vmatmul.msk.f32.gmra.mxu3 %vm248_vm0, %v2102_v32  ;;  %1611 = vmatmul.msk.f32.gmra.mxu1 %vm248_vm0, %v1641_v30 }
  0x8c   : > { %1677 = vmatmul.msk.f32.gmra.mxu2 %vm248_vm0, %v1643_v33 }
  0x8d   : > { %1545 = vmatmul.msk.f32.gmra.mxu0 %vm248_vm0, %v1639_v28 }
  0x93   : > { %1628 = vmatmul.msk.f32.gmra.mxu3 %vm248_vm0, %v2111_v34  ;;  %1612 = vmatmul.msk.f32.gmra.mxu1 %vm248_vm0, %v1642_v31 }
  0x94   : > { %1678 = vmatmul.msk.f32.gmra.mxu2 %vm248_vm0, %v1644_v35 }
  0x95   : > { %1546 = vmatmul.msk.f32.gmra.mxu0 %vm248_vm0, %v1640_v29  ;;  %v1659_v29 = vld [vmem:[%s1987_s27 + $0x110] sm:$0xff] }
  0x98   : > { %v639_v38 = vpop.f32.mrf.mxu1 }
  0x9a   : > { %v362_v37 = vpop.f32.mrf.mxu0 }
  0x9b   : > { %1687 = vmatmul.msk.f32.vlgmr.msra.gmra.mxu3 %vm248_vm0, %v2030_v18  ;;  %v767_v39 = vadd.f32 %v639_v38, %v362_v37  ;;  %1613 = vmatmul.msk.f32.gmra.mxu1 %vm248_vm0, %v1643_v33 }
  0x9c   : > { %1679 = vmatmul.msk.f32.gmra.mxu2 %vm248_vm0, %v2120_v36 }
  0x9d   : > { %1547 = vmatmul.msk.f32.gmra.mxu0 %vm248_vm0, %v1641_v30 }
  0x9e   : > { %v2132_v40 = vpop.f32.mrf.mxu3 }
  0x9f   : > { %v980_v41 = vpop.f32.mrf.mxu2 }
  0xa0   : > { %v1108_v42 = vadd.f32 %v980_v41, %v767_v39  ;;  %v642_v45 = vpop.f32.mrf.mxu1  ;;  %v1660_v39 = vld [vmem:[%s1987_s27 + $0x118] sm:$0xff] }
  0xa2   : > { %1204 = vst [vmem:[%s2137_s30] sm:$0xff] %v1108_v42  ;;  %v365_v44 = vpop.f32.mrf.mxu0  ;;  %v1274_v51 = vmul.f32 %v1108_v42, %v1108_v42 }
  0xa3   : > { %1688 = vmatmul.msk.f32.gmra.mxu3 %vm248_vm0, %v2039_v20  ;;  %v768_v46 = vadd.f32 %v642_v45, %v365_v44  ;;  %1614 = vmatmul.msk.f32.gmra.mxu1 %vm248_vm0, %v1644_v35 }
  0xa4   : > { %1680 = vmatmul.msk.f32.gmra.mxu2 %vm248_vm0, %v2135_v43 }
  0xa5   : > { %1548 = vmatmul.msk.f32.gmra.mxu0 %vm248_vm0, %v1642_v31 }
  0xa6   : > { %v2146_v47 = vpop.f32.mrf.mxu3 }
  0xa7   : > { %v983_v48 = vpop.f32.mrf.mxu2 }
  0xa8   : > { %v1109_v49 = vadd.f32 %v983_v48, %v768_v46  ;;  %v645_v55 = vpop.f32.mrf.mxu1 }
  0xaa   : > { %1205 = vst [vmem:[%s2137_s30 + $0x8] sm:$0xff] %v1109_v49  ;;  %v1236_v52 = vadd.f32 %v1109_v49, %v1108_v42  ;;  %v1275_v53 = vmul.f32 %v1109_v49, %v1109_v49  ;;  %v368_v54 = vpop.f32.mrf.mxu0 }
  0xab   : > { %1689 = vmatmul.msk.f32.gmra.mxu3 %vm248_vm0, %v2048_v22  ;;  %v769_v57 = vadd.f32 %v645_v55, %v368_v54  ;;  %1615 = vmatmul.msk.f32.gmra.mxu1 %vm248_vm0, %v2120_v36 }
  0xac   : > { %v1306_v56 = vadd.f32 %v1275_v53, %v1274_v51  ;;  %1681 = vmatmul.msk.f32.gmra.mxu2 %vm248_vm0, %v2149_v50 }
  0xad   : > { %1549 = vmatmul.msk.f32.gmra.mxu0 %vm248_vm0, %v1643_v33 }
  0xae   : > { %v2159_v58 = vpop.f32.mrf.mxu3 }
  0xaf   : > { %v986_v59 = vpop.f32.mrf.mxu2 }
  0xb0   : > { %v1110_v60 = vadd.f32 %v986_v59, %v769_v57  ;;  %v648_v1 = vpop.f32.mrf.mxu1 }
  0xb2   : > { %1206 = vst [vmem:[%s2137_s30 + $0x10] sm:$0xff] %v1110_v60  ;;  %v1237_v62 = vadd.f32 %v1236_v52, %v1110_v60  ;;  %v1276_v63 = vmul.f32 %v1110_v60, %v1110_v60  ;;  %v371_v0 = vpop.f32.mrf.mxu0 }
  0xb3   : > { %1690 = vmatmul.msk.f32.gmra.mxu3 %vm248_vm0, %v2057_v24  ;;  %v770_v3 = vadd.f32 %v648_v1, %v371_v0  ;;  %1616 = vmatmul.msk.f32.gmra.mxu1 %vm248_vm0, %v2135_v43 }
  0xb4   : > { %v1307_v2 = vadd.f32 %v1306_v56, %v1276_v63  ;;  %1682 = vmatmul.msk.f32.gmra.mxu2 %vm248_vm0, %v2162_v61 }
  0xb5   : > { %1550 = vmatmul.msk.f32.gmra.mxu0 %vm248_vm0, %v1644_v35 }
  0xb6   : > { %v2172_v4 = vpop.f32.mrf.mxu3 }
  0xb7   : > { %v989_v5 = vpop.f32.mrf.mxu2 }
  0xb8   : > { %v1111_v7 = vadd.f32 %v989_v5, %v770_v3  ;;  %v651_v12 = vpop.f32.mrf.mxu1 }
  0xba   : > { %1207 = vst [vmem:[%s2137_s30 + $0x18] sm:$0xff] %v1111_v7  ;;  %v1238_v8 = vadd.f32 %v1237_v62, %v1111_v7  ;;  %v1277_v9 = vmul.f32 %v1111_v7, %v1111_v7  ;;  %v374_v11 = vpop.f32.mrf.mxu0 }
  0xbb   : > { %1691 = vmatmul.msk.f32.gmra.mxu3 %vm248_vm0, %v2102_v32  ;;  %v771_v15 = vadd.f32 %v651_v12, %v374_v11  ;;  %1617 = vmatmul.msk.f32.gmra.mxu1 %vm248_vm0, %v2149_v50 }
  0xbc   : > { %v1308_v13 = vadd.f32 %v1307_v2, %v1277_v9  ;;  %1683 = vmatmul.msk.f32.gmra.mxu2 %vm248_vm0, %v1990_v6 }
  0xbd   : > { %1551 = vmatmul.msk.f32.gmra.mxu0 %vm248_vm0, %v2120_v36 }
  0xbe   : > { %v2183_v17 = vpop.f32.mrf.mxu3 }
  0xbf   : > { %v992_v18 = vpop.f32.mrf.mxu2 }
  0xc0   : > { %v1112_v19 = vadd.f32 %v992_v18, %v771_v15  ;;  %v654_v23 = vpop.f32.mrf.mxu1 }
  0xc2   : > { %1208 = vst [vmem:[%s2137_s30 + $0x20] sm:$0xff] %v1112_v19  ;;  %v1239_v20 = vadd.f32 %v1238_v8, %v1112_v19  ;;  %v1278_v21 = vmul.f32 %v1112_v19, %v1112_v19  ;;  %v377_v22 = vpop.f32.mrf.mxu0 }
  0xc3   : > { %1692 = vmatmul.msk.f32.gmra.mxu3 %vm248_vm0, %v2111_v34  ;;  %v772_v25 = vadd.f32 %v654_v23, %v377_v22  ;;  %1618 = vmatmul.msk.f32.gmra.mxu1 %vm248_vm0, %v2162_v61 }
  0xc4   : > { %v1309_v24 = vadd.f32 %v1308_v13, %v1278_v21  ;;  %1684 = vmatmul.msk.f32.gmra.mxu2 %vm248_vm0, %v2001_v10 }
  0xc5   : > { %1552 = vmatmul.msk.f32.gmra.mxu0 %vm248_vm0, %v2135_v43 }
  0xc6   : > { %v2194_v26 = vpop.f32.mrf.mxu3 }
  0xc7   : > { %v995_v27 = vpop.f32.mrf.mxu2 }
  0xc8   : > { %v1113_v28 = vadd.f32 %v995_v27, %v772_v25  ;;  %v657_v33 = vpop.f32.mrf.mxu1 }
  0xca   : > { %1209 = vst [vmem:[%s2137_s30 + $0x28] sm:$0xff] %v1113_v28  ;;  %v1240_v30 = vadd.f32 %v1239_v20, %v1113_v28  ;;  %v1279_v31 = vmul.f32 %v1113_v28, %v1113_v28  ;;  %v380_v32 = vpop.f32.mrf.mxu0 }
  0xcb   : > { %1693 = vmatmul.msk.f32.gmra.mxu3 %vm248_vm0, %v1659_v29  ;;  %v773_v35 = vadd.f32 %v657_v33, %v380_v32  ;;  %1619 = vmatmul.msk.f32.gmra.mxu1 %vm248_vm0, %v1990_v6 }
  0xcc   : > { %v1310_v34 = vadd.f32 %v1309_v24, %v1279_v31  ;;  %1685 = vmatmul.msk.f32.gmra.mxu2 %vm248_vm0, %v2012_v14 }
  0xcd   : > { %1553 = vmatmul.msk.f32.gmra.mxu0 %vm248_vm0, %v2149_v50 }
  0xce   : > { %v2205_v36 = vpop.f32.mrf.mxu3 }
  0xcf   : > { %v998_v37 = vpop.f32.mrf.mxu2 }
  0xd0   : > { %v1114_v38 = vadd.f32 %v998_v37, %v773_v35  ;;  %v660_v14 = vpop.f32.mrf.mxu1 }
  0xd2   : > { %1210 = vst [vmem:[%s2137_s30 + $0x30] sm:$0xff] %v1114_v38  ;;  %v1241_v41 = vadd.f32 %v1240_v30, %v1114_v38  ;;  %v1280_v42 = vmul.f32 %v1114_v38, %v1114_v38  ;;  %v383_v43 = vpop.f32.mrf.mxu0 }
  0xd3   : > { %1694 = vmatmul.msk.f32.gmra.mxu3 %vm248_vm0, %v1660_v39  ;;  %v774_v45 = vadd.f32 %v660_v14, %v383_v43  ;;  %1620 = vmatmul.msk.f32.gmra.mxu1 %vm248_vm0, %v2001_v10 }
  0xd4   : > { %v1311_v44 = vadd.f32 %v1310_v34, %v1280_v42  ;;  %1686 = vmatmul.msk.f32.gmra.mxu2 %vm248_vm0, %v2021_v16 }
  0xd5   : > { %1554 = vmatmul.msk.f32.gmra.mxu0 %vm248_vm0, %v2162_v61 }
  0xd6   : > { %v2216_v6 = vpop.f32.mrf.mxu3 }
  0xd7   : > { %v1001_v46 = vpop.f32.mrf.mxu2 }
  0xd8   : > { %v1115_v48 = vadd.f32 %v1001_v46, %v774_v45  ;;  %v663_v52 = vpop.f32.mrf.mxu1 }
  0xda   : > { %1211 = vst [vmem:[%s2137_s30 + $0x38] sm:$0xff] %v1115_v48  ;;  %v1242_v49 = vadd.f32 %v1241_v41, %v1115_v48  ;;  %v1281_v50 = vmul.f32 %v1115_v48, %v1115_v48  ;;  %v386_v51 = vpop.f32.mrf.mxu0 }
  0xdb   : > { %v775_v53 = vadd.f32 %v663_v52, %v386_v51 }
  0xdc   : > { %v1312_v16 = vadd.f32 %v1311_v44, %v1281_v50 }
  0xde   : > { %v2219_v54 = vpop.f32.mrf.mxu3 }
  0xdf   : > { %v1004_v55 = vpop.f32.mrf.mxu2 }
  0xe0   : > { %v1116_v56 = vadd.f32 %v1004_v55, %v775_v53  ;;  %v666_v60 = vpop.f32.mrf.mxu1 }
  0xe2   : > { %1212 = vst [vmem:[%s2137_s30 + $0x40] sm:$0xff] %v1116_v56  ;;  %v1243_v57 = vadd.f32 %v1242_v49, %v1116_v56  ;;  %v1282_v59 = vmul.f32 %v1116_v56, %v1116_v56  ;;  %v389_v10 = vpop.f32.mrf.mxu0 }
  0xe3   : > { %v776_v62 = vadd.f32 %v666_v60, %v389_v10 }
  0xe4   : > { %v1313_v61 = vadd.f32 %v1312_v16, %v1282_v59 }
  0xe6   : > { %v2222_v63 = vpop.f32.mrf.mxu3 }
  0xe7   : > { %v1007_v0 = vpop.f32.mrf.mxu2 }
  0xe8   : > { %v1117_v1 = vadd.f32 %v1007_v0, %v776_v62  ;;  %v669_v7 = vpop.f32.mrf.mxu1  ;;  %v791_v62 = vadd.f32 %v2219_v54, %v2132_v40 }
  0xea   : > { %1213 = vst [vmem:[%s2137_s30 + $0x48] sm:$0xff] %v1117_v1  ;;  %v1244_v2 = vadd.f32 %v1243_v57, %v1117_v1  ;;  %v1283_v3 = vmul.f32 %v1117_v1, %v1117_v1  ;;  %v392_v5 = vpop.f32.mrf.mxu0 }
  0xeb   : > { %v777_v9 = vadd.f32 %v669_v7, %v392_v5 }
  0xec   : > { %v1314_v8 = vadd.f32 %v1313_v61, %v1283_v3 }
  0xee   : > { %v2225_v11 = vpop.f32.mrf.mxu3 }
  0xef   : > { %v1010_v12 = vpop.f32.mrf.mxu2 }
  0xf0   : > { %v1118_v13 = vadd.f32 %v1010_v12, %v777_v9  ;;  %v672_v20 = vpop.f32.mrf.mxu1  ;;  %v792_v9 = vadd.f32 %v2222_v63, %v2146_v47 }
  0xf2   : > { %1214 = vst [vmem:[%s2137_s30 + $0x50] sm:$0xff] %v1118_v13  ;;  %v1245_v15 = vadd.f32 %v1244_v2, %v1118_v13  ;;  %v1284_v18 = vmul.f32 %v1118_v13, %v1118_v13  ;;  %v395_v19 = vpop.f32.mrf.mxu0 }
  0xf3   : > { %v778_v22 = vadd.f32 %v672_v20, %v395_v19  ;;  %v793_v20 = vadd.f32 %v2225_v11, %v2159_v58 }
  0xf4   : > { %v1315_v21 = vadd.f32 %v1314_v8, %v1284_v18 }
  0xf6   : > { %v2228_v23 = vpop.f32.mrf.mxu3 }
  0xf7   : > { %v1013_v24 = vpop.f32.mrf.mxu2 }
  0xf8   : > { %v1119_v25 = vadd.f32 %v1013_v24, %v778_v22  ;;  %v675_v30 = vpop.f32.mrf.mxu1 }
  0xfa   : > { %1215 = vst [vmem:[%s2137_s30 + $0x58] sm:$0xff] %v1119_v25  ;;  %v1246_v27 = vadd.f32 %v1245_v15, %v1119_v25  ;;  %v1285_v28 = vmul.f32 %v1119_v25, %v1119_v25  ;;  %v398_v29 = vpop.f32.mrf.mxu0 }
  0xfb   : > { %v779_v32 = vadd.f32 %v675_v30, %v398_v29 }
  0xfc   : > { %v1316_v31 = vadd.f32 %v1315_v21, %v1285_v28  ;;  %v794_v28 = vadd.f32 %v2228_v23, %v2172_v4 }
  0xfe   : > { %v2231_v33 = vpop.f32.mrf.mxu3 }
  0xff   : > { %v1016_v34 = vpop.f32.mrf.mxu2 }
 0x100   : > { %v1120_v35 = vadd.f32 %v1016_v34, %v779_v32  ;;  %v678_v41 = vpop.f32.mrf.mxu1 }
 0x102   : > { %1216 = vst [vmem:[%s2137_s30 + $0x60] sm:$0xff] %v1120_v35  ;;  %v2234_v37 = vadd.f32 %v1246_v27, %v1120_v35  ;;  %v1286_v38 = vmul.f32 %v1120_v35, %v1120_v35  ;;  %v401_v39 = vpop.f32.mrf.mxu0  ;;  %v795_v35 = vadd.f32 %v2231_v33, %v2183_v17 }
 0x103   : > { %v780_v43 = vadd.f32 %v678_v41, %v401_v39 }
 0x104   : > { %v2236_v42 = vadd.f32 %v1316_v31, %v1286_v38 }
 0x106   : > { %v2238_v14 = vpop.f32.mrf.mxu3 }
 0x107   : > { %v1019_v44 = vpop.f32.mrf.mxu2  ;;  %v796_v17 = vadd.f32 %v2238_v14, %v2194_v26 }
 0x108   : > { %v2240_v45 = vadd.f32 %v1019_v44, %v780_v43  ;;  %v681_v48 = vpop.f32.mrf.mxu1 }
 0x10a   : > { %1217 = vst [vmem:[%s2137_s30 + $0x68] sm:$0xff] %v2240_v45  ;;  %v404_v46 = vpop.f32.mrf.mxu0  ;;  %v1287_v44 = vmul.f32 %v2240_v45, %v2240_v45  ;;  %v1248_v33 = vadd.f32 %v2234_v37, %v2240_v45 }
 0x10b   : > { %v781_v49 = vadd.f32 %v681_v48, %v404_v46 }
 0x10e   : > { %v2244_v50 = vpop.f32.mrf.mxu3 }
 0x10f   : > { %v1022_v51 = vpop.f32.mrf.mxu2 }
 0x110   : > { %v2246_v52 = vadd.f32 %v1022_v51, %v781_v49  ;;  %v684_v53 = vpop.f32.mrf.mxu1  ;;  %v1318_v49 = vadd.f32 %v2236_v42, %v1287_v44 }
 0x112   : > { %1218 = vst [vmem:[%s2137_s30 + $0x70] sm:$0xff] %v2246_v52  ;;  %v407_v16 = vpop.f32.mrf.mxu0  ;;  %v1288_v48 = vmul.f32 %v2246_v52, %v2246_v52 }
 0x113   : > { %v782_v55 = vadd.f32 %v684_v53, %v407_v16 }
 0x116   : > { %v2250_v56 = vpop.f32.mrf.mxu3 }
 0x117   : > { %v1025_v57 = vpop.f32.mrf.mxu2 }
 0x118   : > { %v2252_v59 = vadd.f32 %v1025_v57, %v782_v55  ;;  %v687_v60 = vpop.f32.mrf.mxu1  ;;  %v1249_v55 = vadd.f32 %v1248_v33, %v2246_v52 }
 0x11a   : > { %1219 = vst [vmem:[%s2137_s30 + $0x78] sm:$0xff] %v2252_v59  ;;  %v410_v10 = vpop.f32.mrf.mxu0  ;;  %v1289_v51 = vmul.f32 %v2252_v59, %v2252_v59  ;;  %v1250_v14 = vadd.f32 %v1249_v55, %v2252_v59 }
 0x11b   : > { %v783_v61 = vadd.f32 %v687_v60, %v410_v10  ;;  %v1319_v60 = vadd.f32 %v1318_v49, %v1288_v48 }
 0x11d   : > { %v1320_v45 = vadd.f32 %v1319_v60, %v1289_v51 }
 0x11e   : > { %v1052_v1 = vpop.f32.mrf.mxu3 }
 0x11f   : > { %v1028_v0 = vpop.f32.mrf.mxu2  ;;  %v2260_v3 = vadd.f32 %v1052_v1, %v791_v62  ;;  %v797_v1 = vadd.f32 %v2244_v50, %v2205_v36 }
 0x120   : > { %v2258_v2 = vadd.f32 %v1028_v0, %v783_v61  ;;  %v690_v7 = vpop.f32.mrf.mxu1 }
 0x121   : > { %1228 = vst [vmem:[%s2137_s30 + $0xc0] sm:$0xff] %v2260_v3 }
 0x122   : > { %1220 = vst [vmem:[%s2137_s30 + $0x80] sm:$0xff] %v2258_v2  ;;  %v413_v5 = vpop.f32.mrf.mxu0  ;;  %v1290_v26 = vmul.f32 %v2258_v2, %v2258_v2  ;;  %v1251_v62 = vadd.f32 %v1250_v14, %v2258_v2 }
 0x123   : > { %v784_v8 = vadd.f32 %v690_v7, %v413_v5 }
 0x124   : > { %v1321_v0 = vadd.f32 %v1320_v45, %v1290_v26 }
 0x126   : > { %v1055_v40 = vpop.f32.mrf.mxu3 }
 0x127   : > { %v1031_v12 = vpop.f32.mrf.mxu2  ;;  %v2268_v13 = vadd.f32 %v1055_v40, %v792_v9 }
 0x128   : > { %v1125_v54 = vadd.f32 %v1031_v12, %v784_v8  ;;  %v693_v18 = vpop.f32.mrf.mxu1 }
 0x129   : > { %1229 = vst [vmem:[%s2137_s30 + $0xc8] sm:$0xff] %v2268_v13 }
 0x12a   : > { %1221 = vst [vmem:[%s2137_s30 + $0x88] sm:$0xff] %v1125_v54  ;;  %v416_v15 = vpop.f32.mrf.mxu0  ;;  %v1291_v61 = vmul.f32 %v1125_v54, %v1125_v54  ;;  %v1252_v5 = vadd.f32 %v1251_v62, %v1125_v54 }
 0x12b   : > { %v785_v19 = vadd.f32 %v693_v18, %v416_v15 }
 0x12c   : > { %v1322_v59 = vadd.f32 %v1321_v0, %v1291_v61 }
 0x12e   : > { %v1058_v22 = vpop.f32.mrf.mxu3 }
 0x12f   : > { %v1034_v21 = vpop.f32.mrf.mxu2  ;;  %v2275_v63 = vadd.f32 %v1058_v22, %v793_v20 }
 0x130   : > { %v1126_v47 = vadd.f32 %v1034_v21, %v785_v19  ;;  %v696_v25 = vpop.f32.mrf.mxu1 }
 0x131   : > { %1230 = vst [vmem:[%s2137_s30 + $0xd0] sm:$0xff] %v2275_v63 }
 0x132   : > { %1222 = vst [vmem:[%s2137_s30 + $0x90] sm:$0xff] %v1126_v47  ;;  %v419_v24 = vpop.f32.mrf.mxu0  ;;  %v1292_v7 = vmul.f32 %v1126_v47, %v1126_v47  ;;  %v1253_v12 = vadd.f32 %v1252_v5, %v1126_v47 }
 0x133   : > { %v786_v27 = vadd.f32 %v696_v25, %v419_v24  ;;  %v798_v24 = vadd.f32 %v2250_v56, %v2216_v6  ;;  %v1298_v6 = vmul.f32 %v2260_v3, %v2260_v3 }
 0x134   : > { %v1323_v2 = vadd.f32 %v1322_v59, %v1292_v7 }
 0x136   : > { %v1061_v30 = vpop.f32.mrf.mxu3 }
 0x137   : > { %v1037_v29 = vpop.f32.mrf.mxu2  ;;  %v2282_v58 = vadd.f32 %v1061_v30, %v794_v28 }
 0x138   : > { %v1127_v31 = vadd.f32 %v1037_v29, %v786_v27  ;;  %v699_v32 = vpop.f32.mrf.mxu1 }
 0x139   : > { %1231 = vst [vmem:[%s2137_s30 + $0xd8] sm:$0xff] %v2282_v58 }
 0x13a   : > { %1223 = vst [vmem:[%s2137_s30 + $0x98] sm:$0xff] %v1127_v31  ;;  %v422_v11 = vpop.f32.mrf.mxu0  ;;  %v1293_v40 = vmul.f32 %v1127_v31, %v1127_v31  ;;  %v1254_v19 = vadd.f32 %v1253_v12, %v1127_v31 }
 0x13b   : > { %v787_v34 = vadd.f32 %v699_v32, %v422_v11 }
 0x13c   : > { %v1324_v36 = vadd.f32 %v1323_v2, %v1293_v40 }
 0x13e   : > { %v1064_v39 = vpop.f32.mrf.mxu3 }
 0x13f   : > { %v1040_v38 = vpop.f32.mrf.mxu2  ;;  %v2289_v43 = vadd.f32 %v1064_v39, %v795_v35 }
 0x140   : > { %v1128_v41 = vadd.f32 %v1040_v38, %v787_v34  ;;  %v702_v23 = vpop.f32.mrf.mxu1 }
 0x141   : > { %1232 = vst [vmem:[%s2137_s30 + $0xe0] sm:$0xff] %v2289_v43 }
 0x142   : > { %1224 = vst [vmem:[%s2137_s30 + $0xa0] sm:$0xff] %v1128_v41  ;;  %v425_v4 = vpop.f32.mrf.mxu0  ;;  %v1294_v20 = vmul.f32 %v1128_v41, %v1128_v41  ;;  %v1255_v50 = vadd.f32 %v1254_v19, %v1128_v41 }
 0x143   : > { %v788_v46 = vadd.f32 %v702_v23, %v425_v4 }
 0x144   : > { %v1325_v25 = vadd.f32 %v1324_v36, %v1294_v20 }
 0x146   : > { %v1067_v53 = vpop.f32.mrf.mxu3 }
 0x147   : > { %v1043_v16 = vpop.f32.mrf.mxu2  ;;  %v2306_v10 = vadd.f32 %v1067_v53, %v796_v17 }
 0x148   : > { %v1129_v57 = vadd.f32 %v1043_v16, %v788_v46  ;;  %v705_v42 = vpop.f32.mrf.mxu1 }
 0x149   : > { %1233 = vst [vmem:[%s2137_s30 + $0xe8] sm:$0xff] %v2306_v10 }
 0x14a   : > { %1225 = vst [vmem:[%s2137_s30 + $0xa8] sm:$0xff] %v1129_v57  ;;  %v428_v37 = vpop.f32.mrf.mxu0  ;;  %v1295_v54 = vmul.f32 %v1129_v57, %v1129_v57  ;;  %v1256_v27 = vadd.f32 %v1255_v50, %v1129_v57 }
 0x14b   : > { %v789_v52 = vadd.f32 %v705_v42, %v428_v37 }
 0x14c   : > { %v1326_v31 = vadd.f32 %v1325_v25, %v1295_v54 }
 0x14e   : > { %v1070_v9 = vpop.f32.mrf.mxu3 }
 0x14f   : > { %v1046_v8 = vpop.f32.mrf.mxu2  ;;  %v2318_v18 = vadd.f32 %v1070_v9, %v797_v1 }
 0x150   : > { %v1130_v15 = vadd.f32 %v1046_v8, %v789_v52  ;;  %v708_v22 = vpop.f32.mrf.mxu1 }
 0x151   : > { %1234 = vst [vmem:[%s2137_s30 + $0xf0] sm:$0xff] %v2318_v18 }
 0x152   : > { %1226 = vst [vmem:[%s2137_s30 + $0xb0] sm:$0xff] %v1130_v15  ;;  %v431_v21 = vpop.f32.mrf.mxu0  ;;  %v1296_v28 = vmul.f32 %v1130_v15, %v1130_v15  ;;  %v1257_v11 = vadd.f32 %v1256_v27, %v1130_v15 }
 0x153   : > { %v790_v47 = vadd.f32 %v708_v22, %v431_v21 }
 0x154   : > { %v1327_v35 = vadd.f32 %v1326_v31, %v1296_v28 }
 0x156   : > { %v1073_v30 = vpop.f32.mrf.mxu3 }
 0x157   : > { %v1049_v29 = vpop.f32.mrf.mxu2  ;;  %v1139_v34 = vadd.f32 %v1073_v30, %v798_v24 }
 0x158   : > { %v1131_v32 = vadd.f32 %v1049_v29, %v790_v47 }
 0x159   : > { %1235 = vst [vmem:[%s2137_s30 + $0xf8] sm:$0xff] %v1139_v34 }
 0x15a   : > { %1227 = vst [vmem:[%s2137_s30 + $0xb8] sm:$0xff] %v1131_v32  ;;  %v1258_v38 = vadd.f32 %v1257_v11, %v1131_v32  ;;  %v1297_v39 = vmul.f32 %v1131_v32, %v1131_v32 }
 0x15c   : > { %v1259_v56 = vadd.f32 %v1258_v38, %v2260_v3  ;;  %v1328_v41 = vadd.f32 %v1327_v35, %v1297_v39 }
 0x15d   : > { %1790 = shalt.err (!%p1787_p3)
}
 0x15e   : > { %s1887_s30 = smov 128   ;;  %s1888_s5 = smov 8   ;;  %v1299_v3 = vmul.f32 %v2268_v13, %v2268_v13  ;;  %v1260_v4 = vadd.f32 %v1259_v56, %v2268_v13  ;;  %v1329_v23 = vadd.f32 %v1328_v41, %v1298_v6  ;;  %v1300_v44 = vmul.f32 %v2275_v63, %v2275_v63 }
 0x15f   : > { %1712 = dma.vmem_to_hbm [thread:$0]  (%p1954_p5), %s2329_s9, 4096, %s1370_s10, %s1345_s11, %s1887_s30, %s1887_s30, %s1888_s5   ;;  %v1301_v17 = vmul.f32 %v2282_v58, %v2282_v58  ;;  %v1302_v51 = vmul.f32 %v2289_v43, %v2289_v43  ;;  %v1303_v53 = vmul.f32 %v2306_v10, %v2306_v10  ;;  %v1304_v57 = vmul.f32 %v2318_v18, %v2318_v18 }
 0x160   : > { %v1261_v46 = vadd.f32 %v1260_v4, %v2275_v63  ;;  %v1330_v48 = vadd.f32 %v1329_v23, %v1299_v3  ;;  %v1305_v14 = vmul.f32 %v1139_v34, %v1139_v34  ;;  %s1528_s6 = sshll.u32 %s2123_s28, 3  ;;  %s1700_s7 = sshll.u32 %s1935_s19, 3 }
 0x161   : > { %s1382_s10 = scalar_lea.hbm %s2424_s3, %s1700_s7  ;;  %s1349_s11 = sand.u32 1, %s1935_s19  }
 0x162   : > { %v1331_v33 = vadd.f32 %v1330_v48, %v1300_v44  ;;  %v1262_v49 = vadd.f32 %v1261_v46, %v2282_v58  ;;  %s1396_s14 = scalar_lea.hbm %s2425_s4, %s1700_s7  ;;  %s201_s22 = scalar_lea.vmem [#allocation5], %s1528_s6 }
 0x163   : > { %s1384_s23 = sshll.u32 %s201_s22, 4  ;;  %s1386_s27 = sshll.u32 %s1382_s10, 4  ;;  %s1385_s23 = int_to_ptr.vmem [resolvable:$true] %s1384_s23  ;;  %s1387_s27 = int_to_ptr.hbm [resolvable:$true] %s1386_s27 }
 0x164   : > { %v1263_v13 = vadd.f32 %v1262_v49, %v2289_v43  ;;  %v1332_v16 = vadd.f32 %v1331_v33, %v1301_v17  ;;  %s208_s28 = scalar_lea.vmem [#allocation7], %s1528_s6  ;;  %s1400_s30 = sshll.u32 %s1396_s14, 4  ;;  %s2377_s30 = int_to_ptr.hbm [resolvable:$true] %s1400_s30 }
 0x165   : > { %s1398_s29 = sshll.u32 %s208_s28, 4  ;;  %s1350_s19 = scalar_lea.sflag [#allocation6], %s1349_s11  ;;  %s2375_s29 = int_to_ptr.vmem [resolvable:$true] %s1398_s29 }
 0x166   : > { %v1264_v63 = vadd.f32 %v1263_v13, %v2306_v10  ;;  %v1333_v55 = vadd.f32 %v1332_v16, %v1302_v51  ;;  %s1805_s5 = sshra.s32 %s1387_s27, 4  ;;  %s1811_s9 = scalar_lea.hbm %s2424_s3, 16  ;;  %s1806_s5 = int_to_ptr.hbm [resolvable:$true] %s1805_s5 }
 0x167   : > { %s1807_s7 = scalar_lea.hbm %s1806_s5, 8  ;;  %p1812_p9 = scmp.lt.s32.totalorder %s1806_s5, %s2424_s3 }
 0x168   : > { %v1265_v60 = vadd.f32 %v1264_v63, %v2318_v18  ;;  %v1334_v58 = vadd.f32 %v1333_v55, %v1303_v53  ;;  %p1808_p4 = scmp.ne.s32.totalorder %s1806_s5, %s1807_s7  ;;  %p1813_p10 = scmp.lt.s32.totalorder %s1811_s9, %s1807_s7 }
 0x16a   : > { %v1266_v26 = vadd.f32 %v1265_v60, %v1139_v34  ;;  %v1335_v37 = vadd.f32 %v1334_v58, %v1304_v57  ;;  %p1809_p7 = pnand %p1808_p4, %p1954_p5  ;;  %p1814_p11 = por %p1813_p10, %p1812_p9 }
 0x16c   : > { %v1267_v42 = vrot.slane %v1266_v26, 4  ;;  %v1336_v45 = vadd.f32 %v1335_v37, %v1305_v14  ;;  %p1810_p8 = pneg %p1809_p7 }
 0x16e   : > { %v1268_v43 = vadd.f32 %v1267_v42, %v1266_v26  ;;  %v1337_v61 = vrot.slane %v1336_v45, 4  ;;  %p1815_p12 = pnand %p1814_p11, %p1810_p8 }
 0x170   : > { %v1269_v62 = vrot.slane %v1268_v43, 2  ;;  %v1338_v52 = vadd.f32 %v1337_v61, %v1336_v45 }
 0x172   : > { %v1339_v10 = vrot.slane %v1338_v52, 2  ;;  %v1270_v0 = vadd.f32 %v1269_v62, %v1268_v43 }
 0x174   : > { %v1271_v1 = vrot.slane %v1270_v0, 1  ;;  %v1340_v5 = vadd.f32 %v1339_v10, %v1338_v52 }
 0x176   : > { %v1272_v7 = vadd.f32 %v1271_v1, %v1270_v0  ;;  %v1341_v59 = vrot.slane %v1340_v5, 1 }
 0x178   : > { %1273 = vst [vmem:[%s201_s22] sm:$0xff] %v1272_v7  ;;  %v1342_v8 = vadd.f32 %v1341_v59, %v1340_v5 }
 0x179   : > { %1818 = shalt.err (!%p1815_p12)
}
 0x17a   : > { %1713 = dma.vmem_to_hbm [thread:$0]  (%p1954_p5), %s1385_s23, 128, %s1387_s27, %s1350_s19   ;;  %1343 = vst [vmem:[%s208_s28] sm:$0xff] %v1342_v8 }
 0x17b   : > { %s1833_s11 = sshra.s32 %s2377_s30, 4  ;;  %s1839_s5 = scalar_lea.hbm %s2425_s4, 16  ;;  %s1834_s11 = int_to_ptr.hbm [resolvable:$true] %s1833_s11 }
 0x17c   : > { %s1835_s13 = scalar_lea.hbm %s1834_s11, 8  ;;  %p1840_p2 = scmp.lt.s32.totalorder %s1834_s11, %s2425_s4 }
 0x17d   : > { %p1836_p13 = scmp.ne.s32.totalorder %s1834_s11, %s1835_s13  ;;  %p1841_p3 = scmp.lt.s32.totalorder %s1839_s5, %s1835_s13 }
 0x17f   : > { %p1837_p0 = pnand %p1836_p13, %p1954_p5  ;;  %p1842_p4 = por %p1841_p3, %p1840_p2 }
 0x181   : > { %p1838_p1 = pneg %p1837_p0 }
 0x183   : > { %p1843_p7 = pnand %p1842_p4, %p1838_p1 }
 0x185   : > { %1846 = shalt.err (!%p1843_p7)
}
 0x186   : > { %1714 = dma.vmem_to_hbm [thread:$0]  (%p1954_p5), %s2375_s29, 128, %s2377_s30, %s1350_s19  }
 0x187 PF: > { %p1728_p8 = scmp.ge.s32.totalorder %s1885_s18, 2  ;;  %s1412_s23 = sand.u32 1, %s1873_s15  }
 0x188   : > { %s1413_s27 = scalar_lea.sflag [#allocation4], %s1412_s23 }
 0x189   : > { %p1719_p9 = pnand %p1728_p8, %p1958_p6 }
 0x18b   : > { %p1720_p10 = pneg %p1719_p9 }
 0x18d   : > { %1864 = dma.done.wait (%p1720_p10), %s1413_s27, 4096  }
 0x18e   : > { %1866 = vsyncadd (%p1720_p10), %s1413_s27, 4294963200  ;;  %s1422_s28 = sand.u32 1, %s1523_s20  }
 0x18f   : > { %s1423_s8 = scalar_lea.sflag [#allocation6], %s1422_s28 }
 0x190   : > { %1868 = dma.done.wait (%p1720_p10), %s1423_s8, 256  }
 0x191   : > { %1870 = vsyncadd (%p1720_p10), %s1423_s8, 4294967040  ;;  %p18_p5 = scmp.ge.s32.totalorder %s1939_s21, 4   ;;  %s2428_s15 = smov %s1877_s16 }
 0x192   : > { %s2429_s16 = smov %s1881_s17  ;;  %s2430_s17 = smov %s1952_s24 }
 0x193   : > { %s2431_s18 = smov %s1939_s21  ;;  %20 = sbr.rel (!%p18_p5) target bundleno = 5 (0x5), region = 99 }
 0x198   :  { %1439 = vsyncpa [#allocation4], 1 }
 0x199   :  { %1441 = vsyncpa [#allocation4 + $0x1], 1 }
 0x19a   :  { %1442 = vsyncpa [#allocation6], 1 }
 0x19b   :  { %1444 = vsyncpa [#allocation6 + $0x1], 1 }

</bundles_post_ra>
